<compile_context>
chip_gen: v6e
topology: v6e:2x2x1
jax: 0.10.0
libtpu: 0.0.40
codegen_flags: <defaults>
</compile_context>

<pallas_src>
import functools
import math

import jax
import jax.numpy as jnp
from jax.experimental import pallas as pl
from jax.experimental.pallas import tpu as pltpu


# bf16 operands / f32 accumulation on the MXU (preferred on v5e/v6e/v7x;
# v7x has no int MXU path).  Set to jnp.float32 for bit-closer parity with a
# float32 PyTorch reference.
MXU_DTYPE = jnp.bfloat16


def _vmem_limit_bytes():
    """~half of physical VMEM: 32 MiB on v7x (64 MiB phys), 64 MiB on v5e/v6e."""
    try:
        cap = int(pltpu.get_tpu_info().vmem_capacity_bytes)
    except Exception:  # pragma: no cover - conservative fallback
        cap = 128 * 1024 * 1024
    return max(32 * 1024 * 1024, min(cap // 2, 96 * 1024 * 1024))


_VMEM_LIMIT = _vmem_limit_bytes()


def _choose_tile(dim, candidates=(512, 256, 128)):
    """Return (tile, padded_dim).

    * dim <= 128  -> single full-dim block (always legal), no padding.
    * dim divisible by a candidate -> that tile, no padding.
    * otherwise   -> pad up to a multiple of 128 and use 128-tiles (avoids the
      old full-array fallback, which killed pipelining / blew VMEM).
    """
    if dim <= candidates[-1]:
        return dim, dim
    for c in candidates:
        if dim % c == 0:
            return c, dim
    tile = 128
    padded = ((dim + tile - 1) // tile) * tile
    return tile, padded


# ----------------------------------------------------------------------------
# Tiled linear projection:  out = x @ w_t   with w_t = weight.T pre-transposed
# to (K, N) and pre-cast to bf16 ONCE in the wrapper (no per-tile transpose or
# cast inside the K loop).
# ----------------------------------------------------------------------------
def _linear_kernel(x_ref, w_ref, o_ref, acc_ref):
    @pl.when(pl.program_id(2) == 0)
    def _init():
        acc_ref[...] = jnp.zeros_like(acc_ref)

    acc_ref[...] += jnp.dot(
        x_ref[...].astype(MXU_DTYPE),      # no-op when x is already bf16
        w_ref[...],                        # pre-cast bf16 (K, N) tile
        preferred_element_type=jnp.float32,
    )

    @pl.when(pl.program_id(2) == pl.num_programs(2) - 1)
    def _store():
        o_ref[...] = acc_ref[...].astype(o_ref.dtype)


def linear(x, w_t, out_dtype=None):
    """x: (..., K); w_t: (K, N) pre-transposed / pre-cast weight. x @ w_t."""
    *lead, K = x.shape
    M = math.prod(lead) if lead else 1
    Kw, N = w_t.shape
    assert Kw == K, (w_t.shape, x.shape)
    out_dtype = out_dtype or x.dtype

    x2 = x.reshape(M, K)
    tm, Mp = _choose_tile(M)
    tn, Np = _choose_tile(N)
    tk, Kp = _choose_tile(K)
    if Mp != M or Kp != K:
        x2 = jnp.pad(x2, ((0, Mp - M), (0, Kp - K)))
    if Kp != K or Np != N:
        w_t = jnp.pad(w_t, ((0, Kp - K), (0, Np - N)))

    grid = (Mp // tm, Np // tn, Kp // tk)

    out = pl.pallas_call(
        _linear_kernel,
        out_shape=jax.ShapeDtypeStruct((Mp, Np), out_dtype),
        grid_spec=pltpu.PrefetchScalarGridSpec(
            num_scalar_prefetch=0,
            grid=grid,
            in_specs=[
                pl.BlockSpec((tm, tk), lambda i, j, k: (i, k)),   # x tile
                pl.BlockSpec((tk, tn), lambda i, j, k: (k, j)),   # w tile (K,N)
            ],
            out_specs=pl.BlockSpec((tm, tn), lambda i, j, k: (i, j)),
            scratch_shapes=[pltpu.VMEM((tm, tn), jnp.float32)],
        ),
        compiler_params=pltpu.CompilerParams(
            dimension_semantics=("parallel", "parallel", "arbitrary"),
            vmem_limit_bytes=_VMEM_LIMIT,
        ),
    )(x2, w_t)

    if Mp != M or Np != N:
        out = out[:M, :N]
    return out.reshape(*lead, N)


# ----------------------------------------------------------------------------
# Scaled dot-product attention with length masking.
# Grid over (batch, head, query-tile); each step sees one contiguous
# (tq, dh) query block and the full (Lk, dh) key/value block of that head.
# valid_len arrives via scalar prefetch (SMEM) and is indexed with the
# torch `.repeat` (tile) convention: vl[b * num_heads + h].
# ----------------------------------------------------------------------------
def _attn_kernel(vl_ref, q_ref, k_ref, v_ref, o_ref, *, num_heads, head_dim):
    b = pl.program_id(0)
    h = pl.program_id(1)

    q = q_ref[0, 0]                                # (tq, dh)  bf16
    k = k_ref[0, 0]                                # (Lk, dh)  bf16
    v = v_ref[0, 0]                                # (Lk, dh)  bf16
    l_q, l_k = q.shape[0], k.shape[0]

    scores = jax.lax.dot_general(                  # (tq, Lk), f32 accumulation
        q.astype(MXU_DTYPE), k.astype(MXU_DTYPE),
        dimension_numbers=(((1,), (1,)), ((), ())),
        preferred_element_type=jnp.float32,
    ) * jnp.float32(1.0 / math.sqrt(head_dim))

    # d2l.masked_softmax: positions >= valid_len get -1e6 before softmax.
    vl = vl_ref[b * num_heads + h]
    key_idx = jax.lax.broadcasted_iota(jnp.int32, (l_q, l_k), 1)
    scores = jnp.where(key_idx < vl, scores, jnp.float32(-1e6))

    scores = scores - jnp.max(scores, axis=-1, keepdims=True)
    p = jnp.exp(scores)
    attn = p * pl.reciprocal(jnp.sum(p, axis=-1, keepdims=True), approx=True)
    # TODO(synk): nn.Dropout on the attention weights is identity in inference
    # mode and is therefore omitted.

    o_ref[0, 0] = jnp.dot(
        attn.astype(MXU_DTYPE), v.astype(MXU_DTYPE),
        preferred_element_type=jnp.float32,
    ).astype(o_ref.dtype)


def dot_product_attention(q_h, k_h, v_h, vl_flat, num_heads):
    """q_h: (B, H, Lq, dh); k_h, v_h: (B, H, Lk, dh); vl_flat: (B*H,) int32."""
    B, H, Lq, dh = q_h.shape
    Lk = k_h.shape[2]

    # Tile the query axis (pad if not a tile multiple); keep the whole key
    # axis per step.
    # TODO(synk): for long Lk add a flash-style "arbitrary" key axis with
    # online softmax; not needed at these sizes.
    tq, Lq_p = _choose_tile(Lq, candidates=(256, 128))
    if Lq_p != Lq:
        q_h = jnp.pad(q_h, ((0, 0), (0, 0), (0, Lq_p - Lq), (0, 0)))

    kernel = functools.partial(_attn_kernel, num_heads=num_heads, head_dim=dh)
    out = pl.pallas_call(
        kernel,
        out_shape=jax.ShapeDtypeStruct((B, H, Lq_p, dh), q_h.dtype),
        grid_spec=pltpu.PrefetchScalarGridSpec(
            num_scalar_prefetch=1,
            grid=(B, H, Lq_p // tq),
            in_specs=[
                pl.BlockSpec((1, 1, tq, dh), lambda b, h, i, vl: (b, h, i, 0)),
                pl.BlockSpec((1, 1, Lk, dh), lambda b, h, i, vl: (b, h, 0, 0)),
                pl.BlockSpec((1, 1, Lk, dh), lambda b, h, i, vl: (b, h, 0, 0)),
            ],
            out_specs=pl.BlockSpec((1, 1, tq, dh),
                                   lambda b, h, i, vl: (b, h, i, 0)),
        ),
        compiler_params=pltpu.CompilerParams(
            # No cross-step state -> all axes parallel (v7x megacore sharding).
            dimension_semantics=("parallel", "parallel", "parallel"),
            vmem_limit_bytes=_VMEM_LIMIT,
        ),
    )(vl_flat, q_h, k_h, v_h)

    if Lq_p != Lq:
        out = out[:, :, :Lq, :]
    return out


# ----------------------------------------------------------------------------
# Forward pass mirroring the PyTorch module exactly.
# ----------------------------------------------------------------------------
def multi_head_attention(params, query, key, value, valid_len, num_heads):
    W_q, W_k, W_v, W_o = params     # W_k, W_v unused — reference uses W_q 3x
    del W_k, W_v

    B, Lq, q_size = query.shape
    Lk = key.shape[1]
    assert key.shape[-1] == q_size and value.shape[-1] == q_size, (
        "reference module applies W_q to key/value, so feature sizes must match")

    D = W_q.shape[0]
    assert D % num_heads == 0
    dh = D // num_heads

    # One-time weight prep: (N, K) -> (K, N) and cast to bf16 so the kernel's
    # hot K loop never transposes or casts weight tiles.
    wq_t = W_q.T.astype(MXU_DTYPE)
    wo_t = W_o.T.astype(MXU_DTYPE)

    # Three separate projections (no activation-concat HBM round-trip);
    # intermediates carried in bf16 to halve HBM traffic.
    q_p = linear(query, wq_t, out_dtype=MXU_DTYPE)     # (B, Lq, D)
    k_p = linear(key,   wq_t, out_dtype=MXU_DTYPE)     # (B, Lk, D)
    v_p = linear(value, wq_t, out_dtype=MXU_DTYPE)     # (B, Lk, D)

    # transpose_qkv: (B, L, D) -> (B, H, L, dh).  Cheap XLA transpose on bf16
    # data that hands the attention kernel lane-contiguous per-head blocks.
    def split_heads(x):
        b, l, _ = x.shape
        return x.reshape(b, l, num_heads, dh).transpose(0, 2, 1, 3)

    q_h, k_h, v_h = split_heads(q_p), split_heads(k_p), split_heads(v_p)

    BH = B * num_heads
    if valid_len is None:
        vl_flat = jnp.full((BH,), Lk, dtype=jnp.int32)
    elif valid_len.ndim == 1:
        # torch `valid_len.repeat(num_heads)` on a 1-D tensor is a TILE; the
        # spec's forward pass is reproduced verbatim.
        vl_flat = jnp.tile(valid_len, num_heads).astype(jnp.int32)
    else:
        # TODO(synk): 2-D (per-query) valid_len path not wired into the kernel.
        raise NotImplementedError("2-D valid_len not supported")

    attn = dot_product_attention(q_h, k_h, v_h, vl_flat, num_heads)  # (B,H,Lq,dh)

    # transpose_output: (B, H, Lq, dh) -> (B, Lq, D)
    out_concat = attn.transpose(0, 2, 1, 3).reshape(B, Lq, D)
    return linear(out_concat, wo_t, out_dtype=query.dtype)


# ----------------------------------------------------------------------------
# Deterministic parameter init (matches nn.Linear shapes; bias=False).
# ----------------------------------------------------------------------------
def init_params(key_size, query_size, value_size, num_hiddens, rng):
    def uniform_linear(k, out_f, in_f):
        bound = 1.0 / math.sqrt(in_f)
        return jax.random.uniform(
            k, (out_f, in_f), jnp.float32, minval=-bound, maxval=bound)

    k1, k2, k3, k4 = jax.random.split(rng, 4)
    W_q = uniform_linear(k1, num_hiddens, query_size)
    W_k = uniform_linear(k2, num_hiddens, key_size)
    W_v = uniform_linear(k3, num_hiddens, value_size)
    W_o = uniform_linear(k4, num_hiddens, num_hiddens)
    return (W_q, W_k, W_v, W_o)


if __name__ == "__main__":
    batch, seq_len = 2, 8
    key_size = query_size = value_size = 32
    num_hiddens, num_heads = 32, 4

    root = jax.random.PRNGKey(0)
    k_params, k_q, k_k, k_v = jax.random.split(root, 4)

    params = init_params(key_size, query_size, value_size, num_hiddens, k_params)

    query = jax.random.normal(k_q, (batch, seq_len, query_size), jnp.float32)
    key = jax.random.normal(k_k, (batch, seq_len, key_size), jnp.float32)
    value = jax.random.normal(k_v, (batch, seq_len, value_size), jnp.float32)
    valid_len = jnp.array([3, 8], dtype=jnp.int32)

    mha = jax.jit(multi_head_attention, static_argnums=(5,))
    out = mha(params, query, key, value, valid_len, num_heads)
    out = jax.block_until_ready(out)

    assert out.shape == (batch, seq_len, num_hiddens)
    assert bool(jnp.all(jnp.isfinite(out)))
    print("KERNEL_OK")
</pallas_src>

<mosaic_0001>
module attributes {stable_mosaic.version = 11 : i64} {
  func.func @_linear_kernel(%arg0: i32, %arg1: i32, %arg2: i32, %arg3: memref<16x32xf32, #tpu.memory_space<vmem>>, %arg4: memref<32x32xbf16, #tpu.memory_space<vmem>>, %arg5: memref<16x32xbf16, #tpu.memory_space<vmem>>, %arg6: memref<16x32xf32, #tpu.memory_space<vmem>>) attributes {dimension_semantics = [#tpu.dimension_semantics<parallel>, #tpu.dimension_semantics<parallel>, #tpu.dimension_semantics<arbitrary>], iteration_bounds = array<i64: 1, 1, 1>, scalar_prefetch = 0 : i64, scratch_operands = 1 : i64, tpu.core_type = #tpu.core_type<tc>, window_params = [{transform_indices = @transform_0, window_bounds = array<i64: 16, 32>}, {transform_indices = @transform_1, window_bounds = array<i64: 32, 32>}, {transform_indices = @transform_2, window_bounds = array<i64: 16, 32>}]} {
    %c0_i32 = arith.constant 0 : i32
    %0 = arith.cmpi eq, %arg2, %c0_i32 : i32
    %1 = arith.extui %0 : i1 to i32
    %c0_i32_0 = arith.constant 0 : i32
    %2 = arith.cmpi ne, %1, %c0_i32_0 : i32
    scf.if %2 {
      %cst_10 = arith.constant 0.000000e+00 : f32
      %13 = vector.broadcast %cst_10 : f32 to vector<16x32xf32>
      %c0_11 = arith.constant 0 : index
      %c0_12 = arith.constant 0 : index
      %14 = vector.load %arg6[%c0_11, %c0_12] : memref<16x32xf32, #tpu.memory_space<vmem>>, vector<16x32xf32>
      tpu.vector_store %arg6[%c0_11, %c0_12], %13 {strides = array<i32>} : memref<16x32xf32, #tpu.memory_space<vmem>>, vector<16x32xf32>,
    } else {
    }
    %c0 = arith.constant 0 : index
    %c0_1 = arith.constant 0 : index
    %3 = vector.load %arg6[%c0, %c0_1] : memref<16x32xf32, #tpu.memory_space<vmem>>, vector<16x32xf32>
    %c0_2 = arith.constant 0 : index
    %c0_3 = arith.constant 0 : index
    %4 = vector.load %arg3[%c0_2, %c0_3] : memref<16x32xf32, #tpu.memory_space<vmem>>, vector<16x32xf32>
    %5 = arith.truncf %4 : vector<16x32xf32> to vector<16x32xbf16>
    %c0_4 = arith.constant 0 : index
    %c0_5 = arith.constant 0 : index
    %6 = vector.load %arg4[%c0_4, %c0_5] : memref<32x32xbf16, #tpu.memory_space<vmem>>, vector<32x32xbf16>
    %cst = arith.constant dense<0.000000e+00> : vector<16x32xf32>
    %7 = tpu.matmul %5, %6, %cst {dimension_numbers = #tpu.dot_dimension_numbers<[1], [0], [0], [1], [0, 0, 1, 1], [], []>} : vector<16x32xbf16>, vector<32x32xbf16>, vector<16x32xf32> -> vector<16x32xf32>
    %8 = arith.addf %3, %7 : vector<16x32xf32>
    %c0_6 = arith.constant 0 : index
    %c0_7 = arith.constant 0 : index
    %9 = vector.load %arg6[%c0_6, %c0_7] : memref<16x32xf32, #tpu.memory_space<vmem>>, vector<16x32xf32>
    tpu.vector_store %arg6[%c0_6, %c0_7], %8 {strides = array<i32>} : memref<16x32xf32, #tpu.memory_space<vmem>>, vector<16x32xf32>,
    %c0_i32_8 = arith.constant 0 : i32
    %10 = arith.cmpi eq, %arg2, %c0_i32_8 : i32
    %11 = arith.extui %10 : i1 to i32
    %c0_i32_9 = arith.constant 0 : i32
    %12 = arith.cmpi ne, %11, %c0_i32_9 : i32
    scf.if %12 {
      %c0_10 = arith.constant 0 : index
      %c0_11 = arith.constant 0 : index
      %13 = vector.load %arg6[%c0_10, %c0_11] : memref<16x32xf32, #tpu.memory_space<vmem>>, vector<16x32xf32>
      %14 = arith.truncf %13 : vector<16x32xf32> to vector<16x32xbf16>
      %c0_12 = arith.constant 0 : index
      %c0_13 = arith.constant 0 : index
      %15 = vector.load %arg5[%c0_12, %c0_13] : memref<16x32xbf16, #tpu.memory_space<vmem>>, vector<16x32xbf16>
      tpu.vector_store %arg5[%c0_12, %c0_13], %14 {strides = array<i32>} : memref<16x32xbf16, #tpu.memory_space<vmem>>, vector<16x32xbf16>,
    } else {
    }
    return
  }
  func.func @transform_0(%arg0: i32, %arg1: i32, %arg2: i32) -> (i32, i32) {
    %c0_i32 = arith.constant 0 : i32
    return %arg0, %arg2 : i32, i32
  }
  func.func @transform_1(%arg0: i32, %arg1: i32, %arg2: i32) -> (i32, i32) {
    %c0_i32 = arith.constant 0 : i32
    return %arg2, %arg1 : i32, i32
  }
  func.func @transform_2(%arg0: i32, %arg1: i32, %arg2: i32) -> (i32, i32) {
    %c0_i32 = arith.constant 0 : i32
    return %arg0, %arg1 : i32, i32
  }
}

module attributes {stable_mosaic.version = 11 : i64} {
  func.func @_attn_kernel(%arg0: i32, %arg1: i32, %arg2: i32, %arg3: memref<8xi32, #tpu.memory_space<smem>>, %arg4: memref<1x1x8x8xbf16, #tpu.memory_space<vmem>>, %arg5: memref<1x1x8x8xbf16, #tpu.memory_space<vmem>>, %arg6: memref<1x1x8x8xbf16, #tpu.memory_space<vmem>>, %arg7: memref<1x1x8x8xbf16, #tpu.memory_space<vmem>>) attributes {dimension_semantics = [#tpu.dimension_semantics<parallel>, #tpu.dimension_semantics<parallel>, #tpu.dimension_semantics<parallel>], iteration_bounds = array<i64: 2, 4, 1>, scalar_prefetch = 1 : i64, scratch_operands = 0 : i64, tpu.core_type = #tpu.core_type<tc>, window_params = [{transform_indices = @transform_0, window_bounds = array<i64: 1, 1, 8, 8>}, {transform_indices = @transform_1, window_bounds = array<i64: 1, 1, 8, 8>}, {transform_indices = @transform_2, window_bounds = array<i64: 1, 1, 8, 8>}, {transform_indices = @transform_3, window_bounds = array<i64: 1, 1, 8, 8>}]} {
    %c0 = arith.constant 0 : index
    %c0_0 = arith.constant 0 : index
    %c0_1 = arith.constant 0 : index
    %c0_2 = arith.constant 0 : index
    %0 = vector.load %arg4[%c0, %c0_0, %c0_1, %c0_2] : memref<1x1x8x8xbf16, #tpu.memory_space<vmem>>, vector<1x1x8x8xbf16>
    %1 = vector.shape_cast %0 : vector<1x1x8x8xbf16> to vector<8x8xbf16>
    %c0_3 = arith.constant 0 : index
    %c0_4 = arith.constant 0 : index
    %c0_5 = arith.constant 0 : index
    %c0_6 = arith.constant 0 : index
    %2 = vector.load %arg5[%c0_3, %c0_4, %c0_5, %c0_6] : memref<1x1x8x8xbf16, #tpu.memory_space<vmem>>, vector<1x1x8x8xbf16>
    %3 = vector.shape_cast %2 : vector<1x1x8x8xbf16> to vector<8x8xbf16>
    %c0_7 = arith.constant 0 : index
    %c0_8 = arith.constant 0 : index
    %c0_9 = arith.constant 0 : index
    %c0_10 = arith.constant 0 : index
    %4 = vector.load %arg6[%c0_7, %c0_8, %c0_9, %c0_10] : memref<1x1x8x8xbf16, #tpu.memory_space<vmem>>, vector<1x1x8x8xbf16>
    %5 = vector.shape_cast %4 : vector<1x1x8x8xbf16> to vector<8x8xbf16>
    %cst = arith.constant dense<0.000000e+00> : vector<8x8xf32>
    %6 = tpu.matmul %1, %3, %cst {dimension_numbers = #tpu.dot_dimension_numbers<[1], [1], [0], [0], [0, 0, 1, 0], [], []>} : vector<8x8xbf16>, vector<8x8xbf16>, vector<8x8xf32> -> vector<8x8xf32>
    %cst_11 = arith.constant 0.353553385 : f32
    %7 = vector.broadcast %cst_11 : f32 to vector<8x8xf32>
    %8 = arith.mulf %6, %7 : vector<8x8xf32>
    %c4_i32 = arith.constant 4 : i32
    %9 = arith.muli %arg0, %c4_i32 : i32
    %10 = arith.addi %9, %arg1 : i32
    %11 = arith.index_cast %10 : i32 to index
    %12 = memref.load %arg3[%11] : memref<8xi32, #tpu.memory_space<smem>>
    %13 = tpu.iota {dimensions = array<i32: 1>} : vector<8x8xi32>
    %14 = vector.broadcast %12 : i32 to vector<8x8xi32>
    %15 = arith.cmpi slt, %13, %14 : vector<8x8xi32>
    %cst_12 = arith.constant -1.000000e+06 : f32
    %16 = vector.broadcast %cst_12 : f32 to vector<8x8xf32>
    %17 = arith.select %15, %8, %16 : vector<8x8xi1>, vector<8x8xf32>
    %cst_13 = arith.constant dense<0xFF800000> : vector<8xf32>
    %18 = vector.multi_reduction <maximumf>, %17, %cst_13 [1] : vector<8x8xf32> to vector<8xf32>
    %19 = vector.shape_cast %18 : vector<8xf32> to vector<8x1xf32>
    %20 = vector.broadcast %19 : vector<8x1xf32> to vector<8x8xf32>
    %21 = arith.subf %17, %20 : vector<8x8xf32>
    %22 = math.exp %21 : vector<8x8xf32>
    %cst_14 = arith.constant dense<0.000000e+00> : vector<8xf32>
    %23 = vector.multi_reduction <add>, %22, %cst_14 [1] : vector<8x8xf32> to vector<8xf32>
    %24 = vector.shape_cast %23 : vector<8xf32> to vector<8x1xf32>
    %25 = tpu.reciprocal %24 {approx = true} : vector<8x1xf32> -> vector<8x1xf32>
    %26 = vector.broadcast %25 : vector<8x1xf32> to vector<8x8xf32>
    %27 = arith.mulf %22, %26 : vector<8x8xf32>
    %28 = arith.truncf %27 : vector<8x8xf32> to vector<8x8xbf16>
    %cst_15 = arith.constant dense<0.000000e+00> : vector<8x8xf32>
    %29 = tpu.matmul %28, %5, %cst_15 {dimension_numbers = #tpu.dot_dimension_numbers<[1], [0], [0], [1], [0, 0, 1, 1], [], []>} : vector<8x8xbf16>, vector<8x8xbf16>, vector<8x8xf32> -> vector<8x8xf32>
    %30 = arith.truncf %29 : vector<8x8xf32> to vector<8x8xbf16>
    %c0_16 = arith.constant 0 : index
    %c0_17 = arith.constant 0 : index
    %c0_18 = arith.constant 0 : index
    %c0_19 = arith.constant 0 : index
    %31 = vector.load %arg7[%c0_16, %c0_17, %c0_18, %c0_19] : memref<1x1x8x8xbf16, #tpu.memory_space<vmem>>, vector<1x1x8x8xbf16>
    %32 = vector.shape_cast %31 : vector<1x1x8x8xbf16> to vector<8x8xbf16>
    %33 = vector.shape_cast %30 : vector<8x8xbf16> to vector<1x1x8x8xbf16>
    tpu.vector_store %arg7[%c0_16, %c0_17, %c0_18, %c0_19], %33 {strides = array<i32>} : memref<1x1x8x8xbf16, #tpu.memory_space<vmem>>, vector<1x1x8x8xbf16>,
    return
  }
  func.func @transform_0(%arg0: i32, %arg1: i32, %arg2: i32, %arg3: memref<8xi32, #tpu.memory_space<smem>>) -> (i32, i32, i32, i32) {
    %c0_i32 = arith.constant 0 : i32
    %c0_i32_0 = arith.constant 0 : i32
    return %arg0, %arg1, %arg2, %c0_i32 : i32, i32, i32, i32
  }
  func.func @transform_1(%arg0: i32, %arg1: i32, %arg2: i32, %arg3: memref<8xi32, #tpu.memory_space<smem>>) -> (i32, i32, i32, i32) {
    %c0_i32 = arith.constant 0 : i32
    %c0_i32_0 = arith.constant 0 : i32
    %c0_i32_1 = arith.constant 0 : i32
    return %arg0, %arg1, %c0_i32, %c0_i32_0 : i32, i32, i32, i32
  }
  func.func @transform_2(%arg0: i32, %arg1: i32, %arg2: i32, %arg3: memref<8xi32, #tpu.memory_space<smem>>) -> (i32, i32, i32, i32) {
    %c0_i32 = arith.constant 0 : i32
    %c0_i32_0 = arith.constant 0 : i32
    %c0_i32_1 = arith.constant 0 : i32
    return %arg0, %arg1, %c0_i32, %c0_i32_0 : i32, i32, i32, i32
  }
  func.func @transform_3(%arg0: i32, %arg1: i32, %arg2: i32, %arg3: memref<8xi32, #tpu.memory_space<smem>>) -> (i32, i32, i32, i32) {
    %c0_i32 = arith.constant 0 : i32
    %c0_i32_0 = arith.constant 0 : i32
    return %arg0, %arg1, %arg2, %c0_i32 : i32, i32, i32, i32
  }
}

module attributes {stable_mosaic.version = 11 : i64} {
  func.func @_linear_kernel(%arg0: i32, %arg1: i32, %arg2: i32, %arg3: memref<16x32xbf16, #tpu.memory_space<vmem>>, %arg4: memref<32x32xbf16, #tpu.memory_space<vmem>>, %arg5: memref<16x32xf32, #tpu.memory_space<vmem>>, %arg6: memref<16x32xf32, #tpu.memory_space<vmem>>) attributes {dimension_semantics = [#tpu.dimension_semantics<parallel>, #tpu.dimension_semantics<parallel>, #tpu.dimension_semantics<arbitrary>], iteration_bounds = array<i64: 1, 1, 1>, scalar_prefetch = 0 : i64, scratch_operands = 1 : i64, tpu.core_type = #tpu.core_type<tc>, window_params = [{transform_indices = @transform_0, window_bounds = array<i64: 16, 32>}, {transform_indices = @transform_1, window_bounds = array<i64: 32, 32>}, {transform_indices = @transform_2, window_bounds = array<i64: 16, 32>}]} {
    %c0_i32 = arith.constant 0 : i32
    %0 = arith.cmpi eq, %arg2, %c0_i32 : i32
    %1 = arith.extui %0 : i1 to i32
    %c0_i32_0 = arith.constant 0 : i32
    %2 = arith.cmpi ne, %1, %c0_i32_0 : i32
    scf.if %2 {
      %cst_10 = arith.constant 0.000000e+00 : f32
      %12 = vector.broadcast %cst_10 : f32 to vector<16x32xf32>
      %c0_11 = arith.constant 0 : index
      %c0_12 = arith.constant 0 : index
      %13 = vector.load %arg6[%c0_11, %c0_12] : memref<16x32xf32, #tpu.memory_space<vmem>>, vector<16x32xf32>
      tpu.vector_store %arg6[%c0_11, %c0_12], %12 {strides = array<i32>} : memref<16x32xf32, #tpu.memory_space<vmem>>, vector<16x32xf32>,
    } else {
    }
    %c0 = arith.constant 0 : index
    %c0_1 = arith.constant 0 : index
    %3 = vector.load %arg6[%c0, %c0_1] : memref<16x32xf32, #tpu.memory_space<vmem>>, vector<16x32xf32>
    %c0_2 = arith.constant 0 : index
    %c0_3 = arith.constant 0 : index
    %4 = vector.load %arg3[%c0_2, %c0_3] : memref<16x32xbf16, #tpu.memory_space<vmem>>, vector<16x32xbf16>
    %c0_4 = arith.constant 0 : index
    %c0_5 = arith.constant 0 : index
    %5 = vector.load %arg4[%c0_4, %c0_5] : memref<32x32xbf16, #tpu.memory_space<vmem>>, vector<32x32xbf16>
    %cst = arith.constant dense<0.000000e+00> : vector<16x32xf32>
    %6 = tpu.matmul %4, %5, %cst {dimension_numbers = #tpu.dot_dimension_numbers<[1], [0], [0], [1], [0, 0, 1, 1], [], []>} : vector<16x32xbf16>, vector<32x32xbf16>, vector<16x32xf32> -> vector<16x32xf32>
    %7 = arith.addf %3, %6 : vector<16x32xf32>
    %c0_6 = arith.constant 0 : index
    %c0_7 = arith.constant 0 : index
    %8 = vector.load %arg6[%c0_6, %c0_7] : memref<16x32xf32, #tpu.memory_space<vmem>>, vector<16x32xf32>
    tpu.vector_store %arg6[%c0_6, %c0_7], %7 {strides = array<i32>} : memref<16x32xf32, #tpu.memory_space<vmem>>, vector<16x32xf32>,
    %c0_i32_8 = arith.constant 0 : i32
    %9 = arith.cmpi eq, %arg2, %c0_i32_8 : i32
    %10 = arith.extui %9 : i1 to i32
    %c0_i32_9 = arith.constant 0 : i32
    %11 = arith.cmpi ne, %10, %c0_i32_9 : i32
    scf.if %11 {
      %c0_10 = arith.constant 0 : index
      %c0_11 = arith.constant 0 : index
      %12 = vector.load %arg6[%c0_10, %c0_11] : memref<16x32xf32, #tpu.memory_space<vmem>>, vector<16x32xf32>
      %c0_12 = arith.constant 0 : index
      %c0_13 = arith.constant 0 : index
      %13 = vector.load %arg5[%c0_12, %c0_13] : memref<16x32xf32, #tpu.memory_space<vmem>>, vector<16x32xf32>
      tpu.vector_store %arg5[%c0_12, %c0_13], %12 {strides = array<i32>} : memref<16x32xf32, #tpu.memory_space<vmem>>, vector<16x32xf32>,
    } else {
    }
    return
  }
  func.func @transform_0(%arg0: i32, %arg1: i32, %arg2: i32) -> (i32, i32) {
    %c0_i32 = arith.constant 0 : i32
    return %arg0, %arg2 : i32, i32
  }
  func.func @transform_1(%arg0: i32, %arg1: i32, %arg2: i32) -> (i32, i32) {
    %c0_i32 = arith.constant 0 : i32
    return %arg2, %arg1 : i32, i32
  }
  func.func @transform_2(%arg0: i32, %arg1: i32, %arg2: i32) -> (i32, i32) {
    %c0_i32 = arith.constant 0 : i32
    return %arg0, %arg1 : i32, i32
  }
}

</mosaic_0001>

<bundles_post_ra>
// kernel: tile.8
= control target key start
LH: loop header
LB: loop body
LE: loop exit
PB: predicated region body
PF: predicated region fallthrough
CT: control target
= control target key end

     0   :  { %s22_s0 = inlined_call_operand.vmem [shape: s32[2], index: 0, kind: input, shape index: {}]   ;;  %s23_s1 = inlined_call_operand.vmem [shape: s32[4,2], index: 1, kind: output, shape index: {}]  }
   0x1   :  { %v4_v0 = vld [vmem:[%s22_s0] ss:$0 sm:$0xff] }
   0x2   :  { %5 = vst [vmem:[%s23_s1] sm:$0xf] %v4_v0 }

// kernel: tile.9
= control target key start
LH: loop header
LB: loop body
LE: loop exit
PB: predicated region body
PF: predicated region fallthrough
CT: control target
= control target key end

     0   :  { %vm8_vm0 = vcmask 15360   ;;  %s40_s8 = smov 2   ;;  %s41_s9 = smov 4   ;;  %vm14_vm1 = vcmask 64560   ;;  %vm20_vm2 = vcmask 48160   ;;  %vm26_vm3 = vcmask 31760   ;;  %s58_s0 = inlined_call_operand.vmem [shape: s32[4,2], index: 0, kind: input, shape index: {}]   ;;  %s59_s1 = inlined_call_operand.vmem [shape: s32[8], index: 1, kind: output, shape index: {}]  }
   0x1   :  { %v5_v0 = vld [vmem:[%s58_s0] sm:$0xf]  ;;  %s39_s0 = smov 6  }
   0x2   :  { %6 = vst [vmem:[#allocation1] sm:$0xf] %v5_v0 }
   0x9   :  { %v11_v1 = vld [vmem:[#allocation1 + $0x3] sm:$0x1]   ;;  %v23_v2 = vld [vmem:[#allocation1 + $0x1] sm:$0x1]   ;;  %v7_v3 = vld [vmem:[#allocation1] sm:$0x1]  }
   0xa   :  { %12 = vrot.lane.b32.xlu0 %v11_v1, %s39_s0  ;;  %24 = vrot.lane.b32.xlu1 %v23_v2, %s40_s8  ;;  %v17_v4 = vld [vmem:[#allocation1 + $0x2] sm:$0x1]   ;;  %9 = vst.msk [vmem:[#allocation0] sm:$0x1] %vm8_vm0, %v7_v3  }
   0xe   :  { %18 = vrot.lane.b32.xlu0 %v17_v4, %s41_s9 }
  0x7c   :  { %v13_v5 = vpop.permute.xlu0 %12   ;;  %v25_v6 = vpop.permute.xlu1 %24  }
  0x7d   :  { %15 = vst.msk [vmem:[#allocation0] sm:$0x1] %vm14_vm1, %v13_v5  }
  0x80   :  { %v19_v7 = vpop.permute.xlu0 %18  }
  0x81   :  { %21 = vst.msk [vmem:[#allocation0] sm:$0x1] %vm20_vm2, %v19_v7  }
  0x82   :  { %27 = vst.msk [vmem:[#allocation0] sm:$0x1] %vm26_vm3, %v25_v6  }
  0x89   :  { %v32_v8 = vld [vmem:[#allocation0] sm:$0x1] }
  0x8a   :  { %35 = vst [vmem:[%s59_s1] sm:$0x1] %v32_v8 }

// kernel: multi_head_attention.6
= control target key start
LH: loop header
LB: loop body
LE: loop exit
PB: predicated region body
PF: predicated region fallthrough
CT: control target
= control target key end

     0   :  { %vm16_vm0 = vcmask 261120   ;;  %v131_v0 = vmov 0.0   ;;  %vm132_vm1 = vmmov 0   ;;  %vm102_vm2 = vcmask 257024   ;;  %s171_s1 = inlined_call_operand.vmem [shape: bf16[32,32], index: 1, kind: input, shape index: {}]   ;;  %s172_s0 = inlined_call_operand.vmem [shape: f32[16,32], index: 0, kind: input, shape index: {}]   ;;  %s173_s2 = inlined_call_operand.vmem [shape: bf16[16,32], index: 2, kind: output, shape index: {}]  }
   0x1   :  { %119 = vmatprep.subr.bf16.mxu0 %v131_v0  ;;  %v129_v1 = vld [vmem:[%s171_s1 + $0x8] sm:$0xff]   ;;  %123 = vmatprep.mubr.msk.bf16.mxu0 %vm132_vm1, %v131_v0  ;;  %17 = vst.msk [vmem:[#allocation2] sm:$0xff] %vm16_vm0, %v131_v0  ;;  %18 = vst.msk [vmem:[#allocation2 + $0x8] sm:$0xff] %vm16_vm0, %v131_v0  ;;  %v130_v2 = vld [vmem:[%s171_s1] sm:$0xff]  }
   0x2   :  { %120 = vmatpush3.bf16.msra.mxu0 %v129_v1  ;;  %v21_v3 = vld [vmem:[%s172_s0] sm:$0xff]  ;;  %v22_v4 = vld [vmem:[%s172_s0 + $0x8] sm:$0xff] }
   0x3   :  { %121 = vmatprep.subr.bf16.mxu0 %v131_v0  ;;  %v23_v5 = vpack.c.bf16 %v22_v4, %v21_v3 }
   0x6   :  { %122 = vmatpush3.bf16.msra.mxu0 %v130_v2 }
   0x8   :  { %v19_v6 = vld [vmem:[#allocation2] sm:$0xff]  ;;  %v20_v10 = vld [vmem:[#allocation2 + $0x8] sm:$0xff] }
   0x9   :  { %124 = vmatmul.mubr.msk.bf16.vlgmr.msra.gmra.mxu0 %vm16_vm0, %v23_v5 }
  0xc9   :  { %v78_v7 = vpop.f32.mrf.mxu0 }
  0xca   :  { %v85_v8 = vadd.f32 %v78_v7, %v19_v6 }
  0xcb   :  { %v125_v9 = vpop.f32.mrf.mxu0 }
  0xcc   :  { %87 = vst.msk [vmem:[#allocation2] sm:$0xff] %vm16_vm0, %v85_v8 }
  0xcd   :  { %v81_v11 = vpop.f32.mrf.mxu0 }
  0xce   :  { %v86_v12 = vadd.f32 %v81_v11, %v20_v10 }
  0xcf   :  { %v126_v13 = vpop.f32.mrf.mxu0 }
  0xd0   :  { %88 = vst.msk [vmem:[#allocation2 + $0x8] sm:$0xff] %vm16_vm0, %v86_v12 }
  0xd3   :  { %v92_v14 = vld [vmem:[#allocation2] sm:$0xff] }
  0xd4   :  { %v114_v15 = vpack.c.bf16 %v92_v14, %v92_v14 }
  0xd6   :  { %103 = vst.msk [vmem:[%s173_s2] sm:$0xf] %vm102_vm2, %v114_v15 }
  0xd7   :  { %v93_v16 = vld [vmem:[#allocation2 + $0x8] sm:$0xff] }
  0xd8   :  { %v115_v17 = vpack.c.bf16 %v93_v16, %v93_v16 }
  0xda   :  { %104 = vst.msk [vmem:[%s173_s2 + $0x4] sm:$0xf] %vm102_vm2, %v115_v17 }

// kernel: multi_head_attention.8
= control target key start
LH: loop header
LB: loop body
LE: loop exit
PB: predicated region body
PF: predicated region fallthrough
CT: control target
= control target key end

     0   :  { %s801_s0 = inlined_call_operand.vmem [shape: s32[8], index: 0, kind: input, shape index: {}]   ;;  %s802_s1 = inlined_call_operand.vmem [shape: bf16[2,4,8,8], index: 1, kind: input, shape index: {}]   ;;  %s803_s2 = inlined_call_operand.vmem [shape: bf16[2,4,8,8], index: 2, kind: input, shape index: {}]   ;;  %s804_s3 = inlined_call_operand.vmem [shape: bf16[2,4,8,8], index: 3, kind: input, shape index: {}]   ;;  %s805_s4 = inlined_call_operand.vmem [shape: bf16[2,4,8,8], index: 4, kind: output, shape index: {}]  }
   0x1   :  { %s9_s17 = sshll.u32 %s801_s0, 4  ;;  %s10_s17 = int_to_ptr.vmem [resolvable:$true] %s9_s17 }
   0x2   :  { %s638_s18 = scalar_lea.vmem %s10_s17, 16  ;;  %p643_p1 = scmp.lt.s32.totalorder %s10_s17, %s10_s17 }
   0x3   :  { %p639_p0 = scmp.ne.s32.totalorder %s10_s17, %s638_s18  ;;  %p644_p2 = scmp.lt.s32.totalorder %s638_s18, %s638_s18 }
   0x5   :  { %p645_p3 = por %p644_p2, %p643_p1 }
   0x7   :  { %p646_p4 = pnand %p645_p3, %p639_p0 }
   0x9   :  { %649 = shalt.err (!%p646_p4)  }
   0xa   :  { %s692_s19 = smov [#allocation3]  }
   0xb   :  { %12 = dma.vmem_to_smem %s10_s17, 16, %s692_s19, [#allocation2] }
   0xc   :  { %670 = dma.done.wait [#allocation2], 16 }
   0xd   :  { %671 = vsyncadd [#allocation2], 4294967280 }
   0xe   :  { %14 = sfence }
   0xf   :  { %s723_s20 = smov 0   ;;  %s725_s21 = smov 0  }
  0x10   :  { %s727_s22 = smov 0   ;;  %s729_s0 = smov 0  }
  0x11   :  { %s731_s23 = smov 0  }
  0x12 LB: > { %s35_s24 = sadd.s32 1, %s682_s22  ;;  %s39_s25 = sadd.s32 1, %s686_s0  ;;  %s690_s23 = sphi %s731_s23, %s20_s23   ;;  %s686_s0 = sphi %s729_s0, %s809_s0   ;;  %s682_s22 = sphi %s727_s22, %s808_s22   ;;  %s678_s21 = sphi %s725_s21, %s807_s21   ;;  %s674_s20 = sphi %s723_s20, %s806_s20  }
  0x13   : > { %p37_p5 = scmp.ge.s32.totalorder %s35_s24, 4  ;;  %p561_p6 = scmp.ge.s32.totalorder %s690_s23, 1 }
  0x14   : > { %p207_p7 = scmp.lt.s32.totalorder %s690_s23, 9 }
  0x15   : > { %s811_s24 = smov (%p37_p5, %s35_s24), 0  ;;  %s813_s25 = smov (!%p37_p5, %s39_s25), %s686_s0 }
  0x16   : > { %p208_p8 = pnand %p561_p6, %p207_p7  ;;  %p41_p9 = scmp.ge.s32.totalorder %s813_s25, 2 }
  0x17   : > { %p259_p10 = scmp.lt.s32.totalorder (!%p208_p8), %s678_s21, 1  ;;  %p261_p11 = scmp.lt.s32.totalorder (!%p208_p8), %s674_s20, 3 }
  0x18   : > { %s815_s25 = smov (%p41_p9, %s813_s25), 0  ;;  %211 = sbr.rel (%p208_p8) target bundleno = 753 (0x2f1), region = 32 }
  0x19   : > { %s571_s11 = sshll.u32 (!%p208_p8), %s678_s21, 2 }
  0x1a   : > { %s350_s12 = sadd.s32 (!%p208_p8), %s674_s20, %s571_s11 }
  0x1b   : > { %s351_s13 = sld [smem:[#allocation3 + %s350_s12]] (!%p208_p8) }
  0x1d   : > { %v693_v0 = vmov 0.0   ;;  %vm694_vm0 = vmmov 0   ;;  %s260_s26 = scalar_select %p259_p10, %s678_s21, 1  ;;  %vm301_vm1 = vcmask 64512   ;;  %v352_v4 = vlaneseq }
  0x1e   : > { %579 = vmatprep.subr.bf16.mxu0 %v693_v0  ;;  %581 = vmatprep.mubr.msk.bf16.mxu0 %vm694_vm0, %v693_v0  ;;  %s262_s27 = scalar_select %p261_p11, %s674_s20, 3  ;;  %vm372_vm3 = vcmask 1043456   ;;  %vm417_vm4 = vcmask 60416  }
  0x1f   : > { %585 = vmatprep.subr.bf16.mxu1 %v693_v0  ;;  %587 = vmatprep.mubr.msk.bf16.mxu1 %vm694_vm0, %v693_v0  ;;  %s562_s28 = sshll.u32 %s260_s26, 2  ;;  %v353_v5 = vand.u32 127, %v352_v4 }
  0x20   : > { %s267_s29 = sadd.s32 %s562_s28, %s262_s27 }
  0x21   : > { %s761_s30 = sshll.u32 %s267_s29, 2  ;;  %v354_v6 = vstv %s351_s13 }
  0x22   : > { %s277_s7 = scalar_lea.vmem %s803_s2, %s761_s30  ;;  %s269_s10 = scalar_lea.vmem %s802_s1, %s761_s30  ;;  %vm355_vm2 = vcmp.lt.s32.totalorder %v353_v5, %v354_v6 }
  0x23   : > { %v299_v1 = vld [vmem:[%s277_s7] sm:$0xf]  ;;  %s285_s16 = scalar_lea.vmem %s804_s3, %s761_s30  ;;  %s296_s19 = scalar_lea.vmem %s805_s4, %s761_s30 }
  0x24   : > { %v306_v2 = vsel %vm301_vm1, %v299_v1, 0  ;;  %v298_v3 = vld [vmem:[%s269_s10] sm:$0xf] }
  0x25   : > { %580 = vmatpush3.bf16.xpose.msra.mxu0 %v306_v2  ;;  %v300_v19 = vld [vmem:[%s285_s16] sm:$0xf] }
  0x26   : > { %v374_v20 = vsel %vm372_vm3, %v300_v19, 0 }
  0x27   : > { %586 = vmatpush3.bf16.msra.mxu1 %v374_v20 }
  0x2c   : > { %582 = vmatmul.mubr.msk.bf16.vlgmr.msra.gmra.mxu0 %vm301_vm1, %v298_v3 }
  0xec   : > { %v342_v7 = vpop.f32.mrf.mxu0 }
  0xed   : > { %v348_v8 = vmul.f32 0.35355338, %v342_v7 }
  0xee   : > { %v583_v9 = vpop.f32.mrf.mxu0 }
  0xef   : > { %v356_v10 = vsel %vm355_vm2, %v348_v8, -1000000.0 }
  0xf0   : > { %v345_v11 = vpop.f32.mrf.mxu0  ;;  %v357_v12 = vsel %vm301_vm1, %v356_v10, -inf }
  0xf1   : > { %358 = vmax.xlane.f32.xlu0 %v357_v12 }
  0xf2   : > { %v584_v13 = vpop.f32.mrf.mxu0 }
 0x17a   : > { %v359_v14 = vpop.xlane.xlu0 %358 }
 0x17b   : > { %v360_v15 = vsub.f32 %v356_v10, %v359_v14 }
 0x17d   : > { %v361_v16 = vmul.f32 1.442695, %v360_v15 }
 0x17f   : > { %634 = vpow2.f32 %v361_v16 }
 0x18c   : > { %v635_v17 = vpop.eup %634 }
 0x18d   : > { %v363_v18 = vsel %vm301_vm1, %v635_v17, 0.0 }
 0x18e   : > { %364 = vadd.xlane.f32.xlu0 %v363_v18 }
 0x217   : > { %v365_v21 = vpop.xlane.xlu0 %364 }
 0x218   : > { %636 = vrcp.f32 %v365_v21 }
 0x225   : > { %v637_v22 = vpop.eup %636 }
 0x226   : > { %v367_v23 = vmul.f32 %v637_v22, %v635_v17 }
 0x228   : > { %v368_v24 = vpack.c.bf16 %v367_v23, %v367_v23 }
 0x22a   : > { %588 = vmatmul.mubr.msk.bf16.vlgmr.msra.gmra.mxu1 %vm301_vm1, %v368_v24 }
 0x2ea   : > { %v410_v25 = vpop.f32.mrf.mxu1 }
 0x2eb   : > { %v416_v26 = vpack.c.bf16 %v410_v25, %v410_v25 }
 0x2ec   : > { %v589_v27 = vpop.f32.mrf.mxu1 }
 0x2ed   : > { %418 = vst.msk [vmem:[%s296_s19] sm:$0xf] %vm417_vm4, %v416_v26 }
 0x2ee   : > { %v413_v28 = vpop.f32.mrf.mxu1 }
 0x2f0   : > { %v590_v29 = vpop.f32.mrf.mxu1 }
 0x2f1 PF: > { %s20_s23 = sadd.s32 1, %s690_s23   ;;  %s806_s20 = smov %s682_s22 }
 0x2f2   : > { %p17_p12 = scmp.ge.s32.totalorder %s20_s23, 10   ;;  %s807_s21 = smov %s686_s0 }
 0x2f3   : > { %s808_s22 = smov %s811_s24  ;;  %s809_s0 = smov %s815_s25 }
 0x2f4   :  { %19 = sbr.rel (!%p17_p12) target bundleno = 18 (0x12), region = 68 }

// kernel: multi_head_attention.9
= control target key start
LH: loop header
LB: loop body
LE: loop exit
PB: predicated region body
PF: predicated region fallthrough
CT: control target
= control target key end

     0   :  { %v162_v1 = vmov 0.0   ;;  %vm163_vm0 = vmmov 0   ;;  %vm17_vm1 = vcmask 261120   ;;  %s201_s0 = inlined_call_operand.vmem [shape: bf16[16,32], index: 0, kind: input, shape index: {}]   ;;  %s202_s1 = inlined_call_operand.vmem [shape: bf16[32,32], index: 1, kind: input, shape index: {}]   ;;  %s203_s2 = inlined_call_operand.hbm [shape: f32[16,32], index: 2, kind: output, shape index: {}]  }
   0x1   :  { %v137_v0 = vld [vmem:[%s202_s1 + $0x8] sm:$0xff]   ;;  %124 = vmatprep.subr.bf16.mxu0 %v162_v1  ;;  %v138_v2 = vld [vmem:[%s202_s1] sm:$0xff]   ;;  %128 = vmatprep.mubr.msk.bf16.mxu0 %vm163_vm0, %v162_v1  ;;  %18 = vst.msk [vmem:[#allocation2] sm:$0xff] %vm17_vm1, %v162_v1  ;;  %19 = vst.msk [vmem:[#allocation2 + $0x8] sm:$0xff] %vm17_vm1, %v162_v1 }
   0x2   :  { %125 = vmatpush3.bf16.msra.mxu0 %v137_v0 }
   0x3   :  { %126 = vmatprep.subr.bf16.mxu0 %v162_v1 }
   0x4   :  { %7 = vsyncpa [#allocation4], 0  ;;  %v139_v3 = vld [vmem:[%s201_s0] sm:$0xff]   ;;  %s164_s1 = smov [#allocation3]  }
   0x5   :  { %s106_s15 = sshll.u32 %s164_s1, 4  ;;  %s107_s15 = int_to_ptr.vmem [resolvable:$true] %s106_s15 }
   0x6   :  { %127 = vmatpush3.bf16.msra.mxu0 %v138_v2  ;;  %s140_s0 = scalar_lea.vmem %s107_s15, 256  ;;  %p145_p1 = scmp.lt.s32.totalorder %s107_s15, %s107_s15 }
   0x7   :  { %p141_p0 = scmp.ne.s32.totalorder %s107_s15, %s140_s0  ;;  %p146_p2 = scmp.lt.s32.totalorder %s140_s0, %s140_s0 }
   0x8   :  { %v20_v4 = vld [vmem:[#allocation2] sm:$0xff]  ;;  %v21_v8 = vld [vmem:[#allocation2 + $0x8] sm:$0xff] }
   0x9   :  { %129 = vmatmul.mubr.msk.bf16.vlgmr.msra.gmra.mxu0 %vm17_vm1, %v139_v3  ;;  %p147_p3 = por %p146_p2, %p145_p1 }
   0xb   :  { %p148_p4 = pnand %p147_p3, %p141_p0 }
  0xc9   :  { %v83_v5 = vpop.f32.mrf.mxu0 }
  0xca   :  { %v90_v6 = vadd.f32 %v83_v5, %v20_v4 }
  0xcb   :  { %v130_v7 = vpop.f32.mrf.mxu0 }
  0xcc   :  { %92 = vst.msk [vmem:[#allocation2] sm:$0xff] %vm17_vm1, %v90_v6 }
  0xcd   :  { %v86_v9 = vpop.f32.mrf.mxu0 }
  0xce   :  { %v91_v10 = vadd.f32 %v86_v9, %v21_v8 }
  0xcf   :  { %v131_v11 = vpop.f32.mrf.mxu0 }
  0xd0   :  { %93 = vst.msk [vmem:[#allocation2 + $0x8] sm:$0xff] %vm17_vm1, %v91_v10 }
  0xd3   :  { %v97_v12 = vld [vmem:[#allocation2] sm:$0xff] }
  0xd4   :  { %99 = vst.msk [vmem:[#allocation3] sm:$0xff] %vm17_vm1, %v97_v12 }
  0xd7   :  { %v98_v13 = vld [vmem:[#allocation2 + $0x8] sm:$0xff] }
  0xd8   :  { %100 = vst.msk [vmem:[#allocation3 + $0x8] sm:$0xff] %vm17_vm1, %v98_v13 }
  0xd9   :  { %151 = shalt.err (!%p148_p4)
}
  0xda   :  { %s165_s16 = smov 128   ;;  %s166_s17 = smov 8  }
  0xdb   :  { %112 = dma.vmem_to_hbm [thread:$0]  %s107_s15, 256, %s203_s2, [#allocation4], %s165_s16, %s165_s16, %s166_s17  }
  0xdc   :  { %160 = dma.done.wait [#allocation4], 256  }
  0xdd   :  { %161 = vsyncadd [#allocation4], 4294967040 }
  0xde   :  { %116 = vsyncpa [#allocation4], 1 }

</bundles_post_ra>
